<compile_context>
chip_gen: v7x
topology: tpu7x:2x2x1
jax: 0.10.0
libtpu: 0.0.40
codegen_flags: <defaults>
</compile_context>

<pallas_src>
import jax
import jax.numpy as jnp
from jax.experimental import pallas as pl

NEG_INF = jnp.float32(-1e30)


def rnn_seq_kernel(x_ref, h0_ref, wx_ref, wh_ref, b_ref, out_ref, hid_ref):
    """Whole-sequence RNN in one grid point.

    x_ref  : (S, B, I_pad)  one timestep per row of axis 0
    h0_ref : (B, H)         initial hidden state
    wx_ref : (I_pad, N)     fused [i2h | i2o(padded)] weights, input rows
    wh_ref : (H, N)         fused weights, hidden rows
    b_ref  : (1, N)         fused bias (padded logit lanes = -1e30)
    out_ref: (S, B, O_pad)  per-step log-probabilities (padded lanes ~ -1e30)
    hid_ref: (B, H)         final hidden state
    """
    S = x_ref.shape[0]
    H = hid_ref.shape[1]

    # Hoist weight/bias loads out of the unrolled time loop.
    wx = wx_ref[...]
    wh = wh_ref[...]
    b = b_ref[...]

    def step(t, h):
        x = x_ref[t]                                             # (B, I_pad)
        acc = (jnp.dot(x, wx, preferred_element_type=jnp.float32)
               + jnp.dot(h, wh, preferred_element_type=jnp.float32)
               + b)                                              # (B, H+O_pad)
        out_ref[t] = acc[:, H:]        # raw (padded) logits; softmax deferred
        return acc[:, :H]              # new hidden state (carried in VMEM/vregs)

    h_final = jax.lax.fori_loop(0, S, step, h0_ref[...], unroll=True)
    hid_ref[...] = h_final

    # Single fp32 log-softmax pass over the whole (S, B, O_pad) slab,
    # off the recurrence critical path.
    logits = out_ref[...]
    m = jnp.max(logits, axis=-1, keepdims=True)
    lse = jnp.log(jnp.sum(jnp.exp(logits - m), axis=-1, keepdims=True)) + m
    out_ref[...] = logits - lse


def rnn_run_sequence(x_seq, h0, wx_f, wh_f, b_f):
    """Run the RNN over a whole sequence in one (grid-less) pallas_call.

    x_seq : (S, B, I) float32
    h0    : (B, H)    float32
    wx_f  : (I_pad, H + O_pad)  fused/padded weights, input rows
    wh_f  : (H,     H + O_pad)  fused weights, hidden rows
    b_f   : (1,     H + O_pad)  fused bias (padded logit lanes = -1e30)

    Returns (log_probs_padded (S, B, O_pad), final_hidden (B, H)).
    """
    S, B, I = x_seq.shape
    I_pad = wx_f.shape[0]
    if I_pad != I:
        # Sublane-align the input width; padded lanes multiply zero weight rows.
        x_seq = jnp.pad(x_seq, ((0, 0), (0, 0), (0, I_pad - I)))
    H = h0.shape[1]
    N = wx_f.shape[1]
    O_pad = N - H

    out_pad, hidden = pl.pallas_call(
        rnn_seq_kernel,
        out_shape=(
            jax.ShapeDtypeStruct((S, B, O_pad), jnp.float32),  # binds out_ref
            jax.ShapeDtypeStruct((B, H), jnp.float32),         # binds hid_ref
        ),
    )(x_seq, h0, wx_f, wh_f, b_f)
    return out_pad, hidden


def prepare_params(w_i2h, b_i2h, w_i2o, b_i2o, input_size, i_pad, o_pad):
    """Convert PyTorch-layout Linear params into fused/padded kernel params."""
    # PyTorch Linear: y = x @ W.T + b, with W: (out_features, in_features).
    O = w_i2o.shape[0]
    w_i2h_t = w_i2h.T                                          # (I+H, H)
    w_i2o_t = jnp.pad(w_i2o.T, ((0, 0), (0, o_pad - O)))       # (I+H, O_pad)
    fused = jnp.concatenate([w_i2h_t, w_i2o_t], axis=1)        # (I+H, H+O_pad)
    wx_f = jnp.pad(fused[:input_size],
                   ((0, i_pad - input_size), (0, 0)))          # (I_pad, N)
    wh_f = fused[input_size:]                                  # (H, N)
    b_o_p = jnp.concatenate(
        [b_i2o, jnp.full((o_pad - O,), NEG_INF, jnp.float32)])
    b_f = jnp.concatenate([b_i2h, b_o_p])[None, :]             # (1, N)
    return wx_f, wh_f, b_f


if __name__ == "__main__":
    # Shapes implied by the tutorial: N_LETTERS=57, hidden=128, n_categories=18
    INPUT_SIZE = 57
    HIDDEN_SIZE = 128
    OUTPUT_SIZE = 18
    I_PAD = 64            # sublane-aligned input width
    O_PAD = 128           # lane-dense padded logit width

    key = jax.random.PRNGKey(0)
    k1, k2, k3, k4, k5 = jax.random.split(key, 5)

    # PyTorch-style Linear init: U(-1/sqrt(fan_in), +1/sqrt(fan_in)),
    # W stored as (out_features, in_features).
    fan_in = INPUT_SIZE + HIDDEN_SIZE
    bound = 1.0 / jnp.sqrt(jnp.float32(fan_in))
    w_i2h = jax.random.uniform(k1, (HIDDEN_SIZE, fan_in), jnp.float32, -bound, bound)
    b_i2h = jax.random.uniform(k2, (HIDDEN_SIZE,), jnp.float32, -bound, bound)
    w_i2o = jax.random.uniform(k3, (OUTPUT_SIZE, fan_in), jnp.float32, -bound, bound)
    b_i2o = jax.random.uniform(k4, (OUTPUT_SIZE,), jnp.float32, -bound, bound)

    wx_f, wh_f, b_f = prepare_params(w_i2h, b_i2h, w_i2o, b_i2o,
                                     INPUT_SIZE, I_PAD, O_PAD)

    run = jax.jit(rnn_run_sequence)

    # Pure-JAX reference of the PyTorch forward.
    def ref_forward(x, h):
        combined = jnp.concatenate([x, h], axis=1)
        hid = combined @ w_i2h.T + b_i2h
        logits = combined @ w_i2o.T + b_i2o
        return jax.nn.log_softmax(logits, axis=1), hid

    all_ok = True
    # (batch, seq_len): tutorial case (B=1, 'Albert') plus a batched case.
    for idx, (batch, seq_len) in enumerate([(1, 6), (4, 10)]):
        kk = jax.random.fold_in(k5, idx)
        letter_ids = jax.random.randint(kk, (seq_len, batch), 0, INPUT_SIZE)
        # line_to_tensor: one-hot letters, shape (S, B, N_LETTERS)
        line_tensor = jax.nn.one_hot(letter_ids, INPUT_SIZE, dtype=jnp.float32)
        # init_hidden(): zeros(B, hidden_size)
        hidden0 = jnp.zeros((batch, HIDDEN_SIZE), jnp.float32)

        # --- fused Pallas kernel over the whole sequence ---
        out_pad, hidden = run(line_tensor, hidden0, wx_f, wh_f, b_f)
        out_pad = jax.block_until_ready(out_pad)
        hidden = jax.block_until_ready(hidden)

        log_probs_all = out_pad[:, :, :OUTPUT_SIZE]       # (S, B, O)
        final_log_probs = log_probs_all[-1]               # (B, O)

        # --- reference recurrence ---
        h_ref = hidden0
        outs_ref = []
        for t in range(seq_len):
            o_r, h_ref = ref_forward(line_tensor[t], h_ref)
            outs_ref.append(o_r)
        outs_ref = jnp.stack(outs_ref, axis=0)            # (S, B, O)

        assert final_log_probs.shape == (batch, OUTPUT_SIZE)
        assert hidden.shape == (batch, HIDDEN_SIZE)
        all_ok &= bool(jnp.allclose(log_probs_all, outs_ref, atol=1e-4, rtol=1e-4))
        all_ok &= bool(jnp.allclose(hidden, h_ref, atol=1e-4, rtol=1e-4))

    assert all_ok
    print("KERNEL_OK")
</pallas_src>

<mosaic_0001>
module attributes {stable_mosaic.version = 11 : i64} {
  func.func @rnn_seq_kernel(%arg0: memref<6x1x64xf32, #tpu.memory_space<vmem>>, %arg1: memref<1x128xf32, #tpu.memory_space<vmem>>, %arg2: memref<64x256xf32, #tpu.memory_space<vmem>>, %arg3: memref<128x256xf32, #tpu.memory_space<vmem>>, %arg4: memref<1x256xf32, #tpu.memory_space<vmem>>, %arg5: memref<6x1x128xf32, #tpu.memory_space<vmem>>, %arg6: memref<1x128xf32, #tpu.memory_space<vmem>>) attributes {dimension_semantics = [], scalar_prefetch = 0 : i64, scratch_operands = 0 : i64, tpu.core_type = #tpu.core_type<tc>} {
    %c0 = arith.constant 0 : index
    %c0_0 = arith.constant 0 : index
    %0 = vector.load %arg2[%c0, %c0_0] : memref<64x256xf32, #tpu.memory_space<vmem>>, vector<64x256xf32>
    %c0_1 = arith.constant 0 : index
    %c0_2 = arith.constant 0 : index
    %1 = vector.load %arg3[%c0_1, %c0_2] : memref<128x256xf32, #tpu.memory_space<vmem>>, vector<128x256xf32>
    %c0_3 = arith.constant 0 : index
    %c0_4 = arith.constant 0 : index
    %2 = vector.load %arg4[%c0_3, %c0_4] : memref<1x256xf32, #tpu.memory_space<vmem>>, vector<1x256xf32>
    %c0_5 = arith.constant 0 : index
    %c0_6 = arith.constant 0 : index
    %3 = vector.load %arg1[%c0_5, %c0_6] : memref<1x128xf32, #tpu.memory_space<vmem>>, vector<1x128xf32>
    %c0_i32 = arith.constant 0 : i32
    %4 = arith.index_cast %c0_i32 : i32 to index
    %c0_7 = arith.constant 0 : index
    %c0_8 = arith.constant 0 : index
    %5 = vector.load %arg0[%4, %c0_7, %c0_8] : memref<6x1x64xf32, #tpu.memory_space<vmem>>, vector<1x1x64xf32>
    %6 = vector.shape_cast %5 : vector<1x1x64xf32> to vector<1x64xf32>
    %cst = arith.constant dense<0.000000e+00> : vector<1x256xf32>
    %7 = tpu.matmul %6, %0, %cst {dimension_numbers = #tpu.dot_dimension_numbers<[1], [0], [0], [1], [0, 0, 1, 1], [], []>} : vector<1x64xf32>, vector<64x256xf32>, vector<1x256xf32> -> vector<1x256xf32>
    %cst_9 = arith.constant dense<0.000000e+00> : vector<1x256xf32>
    %8 = tpu.matmul %3, %1, %cst_9 {dimension_numbers = #tpu.dot_dimension_numbers<[1], [0], [0], [1], [0, 0, 1, 1], [], []>} : vector<1x128xf32>, vector<128x256xf32>, vector<1x256xf32> -> vector<1x256xf32>
    %9 = arith.addf %7, %8 : vector<1x256xf32>
    %10 = arith.addf %9, %2 : vector<1x256xf32>
    %11 = vector.extract_strided_slice %10 {offsets = [0, 128], sizes = [1, 128], strides = [1, 1]} : vector<1x256xf32> to vector<1x128xf32>
    %12 = arith.index_cast %c0_i32 : i32 to index
    %c0_10 = arith.constant 0 : index
    %c0_11 = arith.constant 0 : index
    %13 = vector.load %arg5[%12, %c0_10, %c0_11] : memref<6x1x128xf32, #tpu.memory_space<vmem>>, vector<1x1x128xf32>
    %14 = vector.shape_cast %13 : vector<1x1x128xf32> to vector<1x128xf32>
    %15 = vector.shape_cast %11 : vector<1x128xf32> to vector<1x1x128xf32>
    tpu.vector_store %arg5[%12, %c0_10, %c0_11], %15 {strides = array<i32>} : memref<6x1x128xf32, #tpu.memory_space<vmem>>, vector<1x1x128xf32>,
    %16 = vector.extract_strided_slice %10 {offsets = [0, 0], sizes = [1, 128], strides = [1, 1]} : vector<1x256xf32> to vector<1x128xf32>
    %c1_i32 = arith.constant 1 : i32
    %17 = arith.index_cast %c1_i32 : i32 to index
    %c0_12 = arith.constant 0 : index
    %c0_13 = arith.constant 0 : index
    %18 = vector.load %arg0[%17, %c0_12, %c0_13] : memref<6x1x64xf32, #tpu.memory_space<vmem>>, vector<1x1x64xf32>
    %19 = vector.shape_cast %18 : vector<1x1x64xf32> to vector<1x64xf32>
    %cst_14 = arith.constant dense<0.000000e+00> : vector<1x256xf32>
    %20 = tpu.matmul %19, %0, %cst_14 {dimension_numbers = #tpu.dot_dimension_numbers<[1], [0], [0], [1], [0, 0, 1, 1], [], []>} : vector<1x64xf32>, vector<64x256xf32>, vector<1x256xf32> -> vector<1x256xf32>
    %cst_15 = arith.constant dense<0.000000e+00> : vector<1x256xf32>
    %21 = tpu.matmul %16, %1, %cst_15 {dimension_numbers = #tpu.dot_dimension_numbers<[1], [0], [0], [1], [0, 0, 1, 1], [], []>} : vector<1x128xf32>, vector<128x256xf32>, vector<1x256xf32> -> vector<1x256xf32>
    %22 = arith.addf %20, %21 : vector<1x256xf32>
    %23 = arith.addf %22, %2 : vector<1x256xf32>
    %24 = vector.extract_strided_slice %23 {offsets = [0, 128], sizes = [1, 128], strides = [1, 1]} : vector<1x256xf32> to vector<1x128xf32>
    %25 = arith.index_cast %c1_i32 : i32 to index
    %c0_16 = arith.constant 0 : index
    %c0_17 = arith.constant 0 : index
    %26 = vector.load %arg5[%25, %c0_16, %c0_17] : memref<6x1x128xf32, #tpu.memory_space<vmem>>, vector<1x1x128xf32>
    %27 = vector.shape_cast %26 : vector<1x1x128xf32> to vector<1x128xf32>
    %28 = vector.shape_cast %24 : vector<1x128xf32> to vector<1x1x128xf32>
    tpu.vector_store %arg5[%25, %c0_16, %c0_17], %28 {strides = array<i32>} : memref<6x1x128xf32, #tpu.memory_space<vmem>>, vector<1x1x128xf32>,
    %29 = vector.extract_strided_slice %23 {offsets = [0, 0], sizes = [1, 128], strides = [1, 1]} : vector<1x256xf32> to vector<1x128xf32>
    %c2_i32 = arith.constant 2 : i32
    %30 = arith.index_cast %c2_i32 : i32 to index
    %c0_18 = arith.constant 0 : index
    %c0_19 = arith.constant 0 : index
    %31 = vector.load %arg0[%30, %c0_18, %c0_19] : memref<6x1x64xf32, #tpu.memory_space<vmem>>, vector<1x1x64xf32>
    %32 = vector.shape_cast %31 : vector<1x1x64xf32> to vector<1x64xf32>
    %cst_20 = arith.constant dense<0.000000e+00> : vector<1x256xf32>
    %33 = tpu.matmul %32, %0, %cst_20 {dimension_numbers = #tpu.dot_dimension_numbers<[1], [0], [0], [1], [0, 0, 1, 1], [], []>} : vector<1x64xf32>, vector<64x256xf32>, vector<1x256xf32> -> vector<1x256xf32>
    %cst_21 = arith.constant dense<0.000000e+00> : vector<1x256xf32>
    %34 = tpu.matmul %29, %1, %cst_21 {dimension_numbers = #tpu.dot_dimension_numbers<[1], [0], [0], [1], [0, 0, 1, 1], [], []>} : vector<1x128xf32>, vector<128x256xf32>, vector<1x256xf32> -> vector<1x256xf32>
    %35 = arith.addf %33, %34 : vector<1x256xf32>
    %36 = arith.addf %35, %2 : vector<1x256xf32>
    %37 = vector.extract_strided_slice %36 {offsets = [0, 128], sizes = [1, 128], strides = [1, 1]} : vector<1x256xf32> to vector<1x128xf32>
    %38 = arith.index_cast %c2_i32 : i32 to index
    %c0_22 = arith.constant 0 : index
    %c0_23 = arith.constant 0 : index
    %39 = vector.load %arg5[%38, %c0_22, %c0_23] : memref<6x1x128xf32, #tpu.memory_space<vmem>>, vector<1x1x128xf32>
    %40 = vector.shape_cast %39 : vector<1x1x128xf32> to vector<1x128xf32>
    %41 = vector.shape_cast %37 : vector<1x128xf32> to vector<1x1x128xf32>
    tpu.vector_store %arg5[%38, %c0_22, %c0_23], %41 {strides = array<i32>} : memref<6x1x128xf32, #tpu.memory_space<vmem>>, vector<1x1x128xf32>,
    %42 = vector.extract_strided_slice %36 {offsets = [0, 0], sizes = [1, 128], strides = [1, 1]} : vector<1x256xf32> to vector<1x128xf32>
    %c3_i32 = arith.constant 3 : i32
    %43 = arith.index_cast %c3_i32 : i32 to index
    %c0_24 = arith.constant 0 : index
    %c0_25 = arith.constant 0 : index
    %44 = vector.load %arg0[%43, %c0_24, %c0_25] : memref<6x1x64xf32, #tpu.memory_space<vmem>>, vector<1x1x64xf32>
    %45 = vector.shape_cast %44 : vector<1x1x64xf32> to vector<1x64xf32>
    %cst_26 = arith.constant dense<0.000000e+00> : vector<1x256xf32>
    %46 = tpu.matmul %45, %0, %cst_26 {dimension_numbers = #tpu.dot_dimension_numbers<[1], [0], [0], [1], [0, 0, 1, 1], [], []>} : vector<1x64xf32>, vector<64x256xf32>, vector<1x256xf32> -> vector<1x256xf32>
    %cst_27 = arith.constant dense<0.000000e+00> : vector<1x256xf32>
    %47 = tpu.matmul %42, %1, %cst_27 {dimension_numbers = #tpu.dot_dimension_numbers<[1], [0], [0], [1], [0, 0, 1, 1], [], []>} : vector<1x128xf32>, vector<128x256xf32>, vector<1x256xf32> -> vector<1x256xf32>
    %48 = arith.addf %46, %47 : vector<1x256xf32>
    %49 = arith.addf %48, %2 : vector<1x256xf32>
    %50 = vector.extract_strided_slice %49 {offsets = [0, 128], sizes = [1, 128], strides = [1, 1]} : vector<1x256xf32> to vector<1x128xf32>
    %51 = arith.index_cast %c3_i32 : i32 to index
    %c0_28 = arith.constant 0 : index
    %c0_29 = arith.constant 0 : index
    %52 = vector.load %arg5[%51, %c0_28, %c0_29] : memref<6x1x128xf32, #tpu.memory_space<vmem>>, vector<1x1x128xf32>
    %53 = vector.shape_cast %52 : vector<1x1x128xf32> to vector<1x128xf32>
    %54 = vector.shape_cast %50 : vector<1x128xf32> to vector<1x1x128xf32>
    tpu.vector_store %arg5[%51, %c0_28, %c0_29], %54 {strides = array<i32>} : memref<6x1x128xf32, #tpu.memory_space<vmem>>, vector<1x1x128xf32>,
    %55 = vector.extract_strided_slice %49 {offsets = [0, 0], sizes = [1, 128], strides = [1, 1]} : vector<1x256xf32> to vector<1x128xf32>
    %c4_i32 = arith.constant 4 : i32
    %56 = arith.index_cast %c4_i32 : i32 to index
    %c0_30 = arith.constant 0 : index
    %c0_31 = arith.constant 0 : index
    %57 = vector.load %arg0[%56, %c0_30, %c0_31] : memref<6x1x64xf32, #tpu.memory_space<vmem>>, vector<1x1x64xf32>
    %58 = vector.shape_cast %57 : vector<1x1x64xf32> to vector<1x64xf32>
    %cst_32 = arith.constant dense<0.000000e+00> : vector<1x256xf32>
    %59 = tpu.matmul %58, %0, %cst_32 {dimension_numbers = #tpu.dot_dimension_numbers<[1], [0], [0], [1], [0, 0, 1, 1], [], []>} : vector<1x64xf32>, vector<64x256xf32>, vector<1x256xf32> -> vector<1x256xf32>
    %cst_33 = arith.constant dense<0.000000e+00> : vector<1x256xf32>
    %60 = tpu.matmul %55, %1, %cst_33 {dimension_numbers = #tpu.dot_dimension_numbers<[1], [0], [0], [1], [0, 0, 1, 1], [], []>} : vector<1x128xf32>, vector<128x256xf32>, vector<1x256xf32> -> vector<1x256xf32>
    %61 = arith.addf %59, %60 : vector<1x256xf32>
    %62 = arith.addf %61, %2 : vector<1x256xf32>
    %63 = vector.extract_strided_slice %62 {offsets = [0, 128], sizes = [1, 128], strides = [1, 1]} : vector<1x256xf32> to vector<1x128xf32>
    %64 = arith.index_cast %c4_i32 : i32 to index
    %c0_34 = arith.constant 0 : index
    %c0_35 = arith.constant 0 : index
    %65 = vector.load %arg5[%64, %c0_34, %c0_35] : memref<6x1x128xf32, #tpu.memory_space<vmem>>, vector<1x1x128xf32>
    %66 = vector.shape_cast %65 : vector<1x1x128xf32> to vector<1x128xf32>
    %67 = vector.shape_cast %63 : vector<1x128xf32> to vector<1x1x128xf32>
    tpu.vector_store %arg5[%64, %c0_34, %c0_35], %67 {strides = array<i32>} : memref<6x1x128xf32, #tpu.memory_space<vmem>>, vector<1x1x128xf32>,
    %68 = vector.extract_strided_slice %62 {offsets = [0, 0], sizes = [1, 128], strides = [1, 1]} : vector<1x256xf32> to vector<1x128xf32>
    %c5_i32 = arith.constant 5 : i32
    %69 = arith.index_cast %c5_i32 : i32 to index
    %c0_36 = arith.constant 0 : index
    %c0_37 = arith.constant 0 : index
    %70 = vector.load %arg0[%69, %c0_36, %c0_37] : memref<6x1x64xf32, #tpu.memory_space<vmem>>, vector<1x1x64xf32>
    %71 = vector.shape_cast %70 : vector<1x1x64xf32> to vector<1x64xf32>
    %cst_38 = arith.constant dense<0.000000e+00> : vector<1x256xf32>
    %72 = tpu.matmul %71, %0, %cst_38 {dimension_numbers = #tpu.dot_dimension_numbers<[1], [0], [0], [1], [0, 0, 1, 1], [], []>} : vector<1x64xf32>, vector<64x256xf32>, vector<1x256xf32> -> vector<1x256xf32>
    %cst_39 = arith.constant dense<0.000000e+00> : vector<1x256xf32>
    %73 = tpu.matmul %68, %1, %cst_39 {dimension_numbers = #tpu.dot_dimension_numbers<[1], [0], [0], [1], [0, 0, 1, 1], [], []>} : vector<1x128xf32>, vector<128x256xf32>, vector<1x256xf32> -> vector<1x256xf32>
    %74 = arith.addf %72, %73 : vector<1x256xf32>
    %75 = arith.addf %74, %2 : vector<1x256xf32>
    %76 = vector.extract_strided_slice %75 {offsets = [0, 128], sizes = [1, 128], strides = [1, 1]} : vector<1x256xf32> to vector<1x128xf32>
    %77 = arith.index_cast %c5_i32 : i32 to index
    %c0_40 = arith.constant 0 : index
    %c0_41 = arith.constant 0 : index
    %78 = vector.load %arg5[%77, %c0_40, %c0_41] : memref<6x1x128xf32, #tpu.memory_space<vmem>>, vector<1x1x128xf32>
    %79 = vector.shape_cast %78 : vector<1x1x128xf32> to vector<1x128xf32>
    %80 = vector.shape_cast %76 : vector<1x128xf32> to vector<1x1x128xf32>
    tpu.vector_store %arg5[%77, %c0_40, %c0_41], %80 {strides = array<i32>} : memref<6x1x128xf32, #tpu.memory_space<vmem>>, vector<1x1x128xf32>,
    %81 = vector.extract_strided_slice %75 {offsets = [0, 0], sizes = [1, 128], strides = [1, 1]} : vector<1x256xf32> to vector<1x128xf32>
    %c6_i32 = arith.constant 6 : i32
    %c0_42 = arith.constant 0 : index
    %c0_43 = arith.constant 0 : index
    %82 = vector.load %arg6[%c0_42, %c0_43] : memref<1x128xf32, #tpu.memory_space<vmem>>, vector<1x128xf32>
    tpu.vector_store %arg6[%c0_42, %c0_43], %81 {strides = array<i32>} : memref<1x128xf32, #tpu.memory_space<vmem>>, vector<1x128xf32>,
    %c0_44 = arith.constant 0 : index
    %c0_45 = arith.constant 0 : index
    %c0_46 = arith.constant 0 : index
    %83 = vector.load %arg5[%c0_44, %c0_45, %c0_46] : memref<6x1x128xf32, #tpu.memory_space<vmem>>, vector<6x1x128xf32>
    %cst_47 = arith.constant dense<0xFF800000> : vector<6x1xf32>
    %84 = vector.multi_reduction <maximumf>, %83, %cst_47 [2] : vector<6x1x128xf32> to vector<6x1xf32>
    %85 = vector.shape_cast %84 : vector<6x1xf32> to vector<6x1x1xf32>
    %86 = vector.broadcast %85 : vector<6x1x1xf32> to vector<6x1x128xf32>
    %87 = arith.subf %83, %86 : vector<6x1x128xf32>
    %88 = math.exp %87 : vector<6x1x128xf32>
    %cst_48 = arith.constant dense<0.000000e+00> : vector<6x1xf32>
    %89 = vector.multi_reduction <add>, %88, %cst_48 [2] : vector<6x1x128xf32> to vector<6x1xf32>
    %90 = vector.shape_cast %89 : vector<6x1xf32> to vector<6x1x1xf32>
    %91 = math.log %90 : vector<6x1x1xf32>
    %92 = arith.addf %91, %85 : vector<6x1x1xf32>
    %93 = vector.broadcast %92 : vector<6x1x1xf32> to vector<6x1x128xf32>
    %94 = arith.subf %83, %93 : vector<6x1x128xf32>
    %c0_49 = arith.constant 0 : index
    %c0_50 = arith.constant 0 : index
    %c0_51 = arith.constant 0 : index
    %95 = vector.load %arg5[%c0_49, %c0_50, %c0_51] : memref<6x1x128xf32, #tpu.memory_space<vmem>>, vector<6x1x128xf32>
    tpu.vector_store %arg5[%c0_49, %c0_50, %c0_51], %94 {strides = array<i32>} : memref<6x1x128xf32, #tpu.memory_space<vmem>>, vector<6x1x128xf32>,
    return
  }
}

</mosaic_0001>

<bundles_post_ra>
// kernel: rnn_run_sequence.1
= control target key start
LH: loop header
LB: loop body
LE: loop exit
PB: predicated region body
PF: predicated region fallthrough
CT: control target
= control target key end

     0   :  { %12 = vsyncpa [#allocation3], 0  ;;  %s1972_s0 = inlined_call_operand.vmem [shape: f32[6,1,64], index: 0, kind: input, shape index: {}]   ;;  %s1973_s1 = inlined_call_operand.vmem [shape: f32[1,128], index: 1, kind: input, shape index: {}]   ;;  %s1974_s2 = inlined_call_operand.hbm [shape: f32[64,256], index: 2, kind: input, shape index: {}]   ;;  %s1975_s3 = inlined_call_operand.hbm [shape: f32[128,256], index: 3, kind: input, shape index: {}]   ;;  %s1976_s4 = inlined_call_operand.vmem [shape: f32[1,256], index: 4, kind: input, shape index: {}]   ;;  %s1977_s5 = inlined_call_operand.hbm [shape: f32[6,1,128], index: 5, kind: output, shape index: {0}]   ;;  %s1978_s6 = inlined_call_operand.hbm [shape: f32[1,128], index: 6, kind: output, shape index: {1}]  }
   0x1   :  { %13 = vsyncpa [#allocation6], 0 }
   0x2   :  { %14 = vsyncpa [#allocation4], 0 }
   0x3   :  { %15 = vsyncpa [#allocation9], 0  ;;  %s1581_s21 = smov [#allocation2]   ;;  %s1485_s25 = scalar_lea.hbm %s1974_s2, 2048 }
   0x4   :  { %s25_s22 = sshll.u32 %s1581_s21, 4  ;;  %p1486_p0 = scmp.ne.s32.totalorder %s1974_s2, %s1485_s25  ;;  %s26_s22 = int_to_ptr.vmem [resolvable:$true] %s25_s22 }
   0x5   :  { %p1489_p1 = scmp.lt.u32.totalorder %s1485_s25, %s1974_s2 }
   0x7   :  { %p1491_p2 = pnand %p1489_p1, %p1486_p0 }
   0x9   :  { %1494 = shalt.err (!%p1491_p2)
}
   0xa   :  { %s1495_s30 = scalar_lea.vmem %s26_s22, 2048  ;;  %p1500_p4 = scmp.lt.s32.totalorder %s26_s22, %s26_s22 }
   0xb   :  { %p1496_p3 = scmp.ne.s32.totalorder %s26_s22, %s1495_s30  ;;  %p1501_p5 = scmp.lt.s32.totalorder %s1495_s30, %s1495_s30 }
   0xd   :  { %p1502_p6 = por %p1501_p5, %p1500_p4 }
   0xf   :  { %p1503_p7 = pnand %p1502_p6, %p1496_p3 }
  0x11   :  { %1506 = shalt.err (!%p1503_p7)
}
  0x12   :  { %s1582_s7 = smov 256   ;;  %s1583_s8 = smov 16  }
  0x13   :  { %31 = dma.hbm_to_vmem [thread:$0]  %s1974_s2, 2048, %s26_s22, [#allocation3], %s1582_s7, %s1582_s7, %s1583_s8  }
  0x14   :  { %s1584_s11 = smov [#allocation5]   ;;  %s1507_s15 = scalar_lea.hbm %s1975_s3, 4096 }
  0x15   :  { %s37_s12 = sshll.u32 %s1584_s11, 4  ;;  %p1508_p8 = scmp.ne.s32.totalorder %s1975_s3, %s1507_s15  ;;  %s38_s12 = int_to_ptr.vmem [resolvable:$true] %s37_s12 }
  0x16   :  { %p1511_p9 = scmp.lt.u32.totalorder %s1507_s15, %s1975_s3 }
  0x18   :  { %p1513_p10 = pnand %p1511_p9, %p1508_p8 }
  0x1a   :  { %1516 = shalt.err (!%p1513_p10)
}
  0x1b   :  { %s1517_s20 = scalar_lea.vmem %s38_s12, 4096  ;;  %p1522_p12 = scmp.lt.s32.totalorder %s38_s12, %s38_s12 }
  0x1c   :  { %p1518_p11 = scmp.ne.s32.totalorder %s38_s12, %s1517_s20  ;;  %p1523_p13 = scmp.lt.s32.totalorder %s1517_s20, %s1517_s20 }
  0x1e   :  { %p1524_p0 = por %p1523_p13, %p1522_p12 }
  0x20   :  { %p1525_p1 = pnand %p1524_p0, %p1518_p11 }
  0x22   :  { %1528 = shalt.err (!%p1525_p1)
}
  0x23   :  { %43 = dma.hbm_to_vmem [thread:$0]  %s1975_s3, 4096, %s38_s12, [#allocation6], %s1582_s7, %s1582_s7, %s1583_s8  }
  0x24   :  { %1573 = dma.done.wait [#allocation3], 2048  }
  0x25   :  { %1574 = vsyncadd [#allocation3], 4294965248 }
  0x26   :  { %1575 = dma.done.wait [#allocation6], 4096  }
  0x27   :  { %1576 = vsyncadd [#allocation6], 4294963200  ;;  %v1585_v0 = vmov 0.0   ;;  %v69_v1 = vld [vmem:[#allocation5 + $0x8] sm:$0xff]  ;;  %v71_v2 = vld [vmem:[#allocation5 + $0x18] sm:$0xff]  ;;  %vm174_vm0 = vcmask 523264  }
  0x28   :  { %167 = vmatprep.mubr.f32.mxu0 %v1585_v0  ;;  %329 = vmatprep.mubr.f32.mxu1 %v1585_v0  ;;  %v68_v3 = vld [vmem:[#allocation5] sm:$0xff]  ;;  %v1652_v4 = vpack.c.bf16 %v71_v2, %v69_v1  ;;  %v70_v5 = vld [vmem:[#allocation5 + $0x10] sm:$0xff]  ;;  %v73_v6 = vld [vmem:[#allocation5 + $0x28] sm:$0xff]  ;;  %vm1025_vm1 = vcmask 1040384  }
  0x29   :  { %v75_v7 = vld [vmem:[#allocation5 + $0x38] sm:$0xff]  ;;  %v1654_v8 = vpack.c.bf16 %v70_v5, %v68_v3  ;;  %v72_v10 = vld [vmem:[#allocation5 + $0x20] sm:$0xff]  ;;  %v74_v11 = vld [vmem:[#allocation5 + $0x30] sm:$0xff] }
  0x2a   :  { %v1656_v9 = vpack.c.bf16 %v75_v7, %v73_v6  ;;  %v77_v12 = vld [vmem:[#allocation5 + $0x48] sm:$0xff]  ;;  %1154 = vmatprep.subr.bf16.mxu0 %v1652_v4  ;;  %v79_v13 = vld [vmem:[#allocation5 + $0x58] sm:$0xff]  ;;  %1202 = vmatprep.subr.bf16.mxu1 %v1652_v4  ;;  %v1661_v14 = vpack.c.bf16 %v74_v11, %v72_v10  ;;  %v76_v16 = vld [vmem:[#allocation5 + $0x40] sm:$0xff] }
  0x2b   :  { %1156 = vmatpush1.bf16.msra.mxu0 %v1654_v8  ;;  %1204 = vmatpush1.bf16.msra.mxu1 %v1654_v8  ;;  %v1665_v15 = vpack.c.bf16 %v79_v13, %v77_v12  ;;  %v78_v17 = vld [vmem:[#allocation5 + $0x50] sm:$0xff]  ;;  %v81_v18 = vld [vmem:[#allocation5 + $0x68] sm:$0xff]  ;;  %v83_v19 = vld [vmem:[#allocation5 + $0x78] sm:$0xff] }
  0x2c   :  { %1158 = vmatprep.subr.bf16.mxu0 %v1656_v9  ;;  %1206 = vmatprep.subr.bf16.mxu1 %v1656_v9  ;;  %v1669_v20 = vpack.c.bf16 %v78_v17, %v76_v16  ;;  %v1673_v21 = vpack.c.bf16 %v83_v19, %v81_v18  ;;  %v80_v22 = vld [vmem:[#allocation5 + $0x60] sm:$0xff]  ;;  %v82_v23 = vld [vmem:[#allocation5 + $0x70] sm:$0xff]  ;;  %v85_v24 = vld [vmem:[#allocation5 + $0x88] sm:$0xff]  ;;  %v250_v17 = vlaneseq }
  0x2d   :  { %v87_v25 = vld [vmem:[#allocation5 + $0x98] sm:$0xff]  ;;  %v1677_v26 = vpack.c.bf16 %v82_v23, %v80_v22  ;;  %v84_v28 = vld [vmem:[#allocation5 + $0x80] sm:$0xff]  ;;  %v86_v29 = vld [vmem:[#allocation5 + $0x90] sm:$0xff] }
  0x2e   :  { %v1681_v27 = vpack.c.bf16 %v87_v25, %v85_v24  ;;  %v89_v30 = vld [vmem:[#allocation5 + $0xa8] sm:$0xff]  ;;  %v91_v31 = vld [vmem:[#allocation5 + $0xb8] sm:$0xff]  ;;  %v1685_v32 = vpack.c.bf16 %v86_v29, %v84_v28  ;;  %v88_v34 = vld [vmem:[#allocation5 + $0xa0] sm:$0xff]  ;;  %v251_v18 = vshrl.u32 %v250_v17, 7 }
  0x2f   :  { %1160 = vmatpush1.bf16.msra.mxu0 %v1661_v14  ;;  %1208 = vmatpush1.bf16.msra.mxu1 %v1661_v14  ;;  %v1689_v33 = vpack.c.bf16 %v91_v31, %v89_v30  ;;  %v90_v35 = vld [vmem:[#allocation5 + $0xb0] sm:$0xff]  ;;  %v93_v36 = vld [vmem:[#allocation5 + $0xc8] sm:$0xff]  ;;  %v95_v37 = vld [vmem:[#allocation5 + $0xd8] sm:$0xff] }
  0x30   :  { %1162 = vmatprep.subr.bf16.mxu0 %v1665_v15  ;;  %1210 = vmatprep.subr.bf16.mxu1 %v1665_v15  ;;  %v1693_v38 = vpack.c.bf16 %v90_v35, %v88_v34  ;;  %v1697_v39 = vpack.c.bf16 %v95_v37, %v93_v36  ;;  %v92_v40 = vld [vmem:[#allocation5 + $0xc0] sm:$0xff]  ;;  %v94_v41 = vld [vmem:[#allocation5 + $0xd0] sm:$0xff]  ;;  %v97_v42 = vld [vmem:[#allocation5 + $0xe8] sm:$0xff]  ;;  %v252_v19 = vsub.s32 0, %v251_v18  ;;  %v256_v23 = vsub.s32 1, %v251_v18 }
  0x31   :  { %v99_v43 = vld [vmem:[#allocation5 + $0xf8] sm:$0xff]  ;;  %v1701_v44 = vpack.c.bf16 %v94_v41, %v92_v40  ;;  %v96_v46 = vld [vmem:[#allocation5 + $0xe0] sm:$0xff]  ;;  %v98_v47 = vld [vmem:[#allocation5 + $0xf0] sm:$0xff] }
  0x32   :  { %v1705_v45 = vpack.c.bf16 %v99_v43, %v97_v42  ;;  %v53_v48 = vld [vmem:[#allocation2 + $0x8] sm:$0xff]  ;;  %v55_v49 = vld [vmem:[#allocation2 + $0x18] sm:$0xff]  ;;  %v1709_v50 = vpack.c.bf16 %v98_v47, %v96_v46  ;;  %v52_v52 = vld [vmem:[#allocation2] sm:$0xff] }
  0x33   :  { %1164 = vmatpush1.bf16.msra.mxu0 %v1669_v20  ;;  %1212 = vmatpush1.bf16.msra.mxu1 %v1669_v20  ;;  %v1713_v51 = vpack.c.bf16 %v55_v49, %v53_v48  ;;  %v54_v53 = vld [vmem:[#allocation2 + $0x10] sm:$0xff]  ;;  %v57_v54 = vld [vmem:[#allocation2 + $0x28] sm:$0xff]  ;;  %v59_v55 = vld [vmem:[#allocation2 + $0x38] sm:$0xff] }
  0x34   :  { %1166 = vmatprep.subr.bf16.mxu0 %v1673_v21  ;;  %1214 = vmatprep.subr.bf16.mxu1 %v1673_v21  ;;  %v101_v56 = vld [vmem:[%s1973_s1] sm:$0x1]  ;;  %v1720_v57 = vpack.c.bf16 %v54_v53, %v52_v52  ;;  %v1724_v58 = vpack.c.bf16 %v59_v55, %v57_v54  ;;  %v58_v60 = vld [vmem:[#allocation2 + $0x30] sm:$0xff]  ;;  %v61_v61 = vld [vmem:[#allocation2 + $0x48] sm:$0xff] }
  0x35   :  { %v56_v59 = vld [vmem:[#allocation2 + $0x20] sm:$0xff]  ;;  %v63_v62 = vld [vmem:[#allocation2 + $0x58] sm:$0xff]  ;;  %v62_v3 = vld [vmem:[#allocation2 + $0x50] sm:$0xff] }
  0x36   :  { %v1728_v63 = vpack.c.bf16 %v58_v60, %v56_v59  ;;  %v1732_v1 = vpack.c.bf16 %v63_v62, %v61_v61  ;;  %v60_v2 = vld [vmem:[#allocation2 + $0x40] sm:$0xff]  ;;  %v65_v5 = vld [vmem:[#allocation2 + $0x68] sm:$0xff]  ;;  %v67_v6 = vld [vmem:[#allocation2 + $0x78] sm:$0xff] }
  0x37   :  { %1168 = vmatpush1.bf16.msra.mxu0 %v1677_v26  ;;  %1216 = vmatpush1.bf16.msra.mxu1 %v1677_v26  ;;  %v1735_v7 = vpack.c.bf16 %v62_v3, %v60_v2  ;;  %v1738_v10 = vpack.c.bf16 %v67_v6, %v65_v5  ;;  %v64_v11 = vld [vmem:[#allocation2 + $0x60] sm:$0xff]  ;;  %v66_v12 = vld [vmem:[#allocation2 + $0x70] sm:$0xff] }
  0x38   :  { %1170 = vmatprep.subr.bf16.mxu0 %v1681_v27  ;;  %1218 = vmatprep.subr.bf16.mxu1 %v1681_v27  ;;  %v1741_v13 = vpack.c.bf16 %v66_v12, %v64_v11  ;;  %v102_v16 = vld [vmem:[%s1972_s0] sm:$0x1]  ;;  %v1143_v36 = vld [vmem:[%s1972_s0 + $0x1] sm:$0x1]  ;;  %v1145_v47 = vld [vmem:[%s1972_s0 + $0x2] sm:$0x1] }
  0x39   :  { %v100_v22 = vld [vmem:[%s1976_s4] sm:$0x3] }
  0x3a   :  { %v1770_v24 = vrot.slane %v100_v22, %v252_v19  ;;  %v1772_v25 = vrot.slane %v100_v22, %v256_v23 }
  0x3b   :  { %1172 = vmatpush1.bf16.msra.mxu0 %v1685_v32  ;;  %1220 = vmatpush1.bf16.msra.mxu1 %v1685_v32 }
  0x3c   :  { %1174 = vmatprep.subr.bf16.mxu0 %v1689_v33  ;;  %1222 = vmatprep.subr.bf16.mxu1 %v1689_v33 }
  0x3f   :  { %1176 = vmatpush1.bf16.msra.mxu0 %v1693_v38  ;;  %1224 = vmatpush1.bf16.msra.mxu1 %v1693_v38 }
  0x40   :  { %1178 = vmatprep.subr.bf16.mxu0 %v1697_v39  ;;  %1226 = vmatprep.subr.bf16.mxu1 %v1697_v39 }
  0x43   :  { %1180 = vmatpush1.bf16.msra.mxu0 %v1701_v44  ;;  %1228 = vmatpush1.bf16.msra.mxu1 %v1701_v44 }
  0x44   :  { %1182 = vmatprep.subr.bf16.mxu0 %v1705_v45  ;;  %1230 = vmatprep.subr.bf16.mxu1 %v1705_v45 }
  0x47   :  { %1184 = vmatpush1.bf16.msra.mxu0 %v1709_v50  ;;  %1232 = vmatpush1.bf16.msra.mxu1 %v1709_v50 }
  0x48   :  { %1186 = vmatprep.subr.bf16.mxu0 %v1713_v51  ;;  %1234 = vmatprep.subr.bf16.mxu1 %v1713_v51 }
  0x4a   :  { %168 = vmatmul.mubr.f32.vlgmr.msra.gmra.mrb[0].mxu0 %v101_v56  ;;  %v1147_v56 = vld [vmem:[%s1972_s0 + $0x3] sm:$0x1] }
  0x4b   :  { %1188 = vmatpush1.bf16.msra.mxu0 %v1720_v57  ;;  %242 = vmatprep.mubr.f32.mxu0 %v1585_v0 }
  0x4c   :  { %1190 = vmatprep.subr.bf16.mxu0 %v1724_v58 }
  0x4f   :  { %1192 = vmatpush1.bf16.msra.mxu0 %v1728_v63 }
  0x50   :  { %1194 = vmatprep.subr.bf16.mxu0 %v1732_v1 }
  0x53   :  { %1196 = vmatpush1.bf16.msra.mxu0 %v1735_v7 }
  0x54   :  { %1198 = vmatprep.subr.bf16.mxu0 %v1738_v10 }
  0x57   :  { %1200 = vmatpush1.bf16.msra.mxu0 %v1741_v13 }
  0x58   :  { %1250 = vmatprep.subr.bf16.mxu0 %v1652_v4 }
  0x5a   :  { %1142 = vmatmul.mubr.msk.f32.vlgmr.msra.gmra.mrb[0].mxu0 %vm174_vm0, %v102_v16 }
  0x5b   :  { %1252 = vmatpush1.bf16.msra.mxu0 %v1654_v8  ;;  %480 = vmatprep.mubr.f32.mxu0 %v1585_v0 }
  0x5c   :  { %1254 = vmatprep.subr.bf16.mxu0 %v1656_v9 }
  0x5f   :  { %1256 = vmatpush1.bf16.msra.mxu0 %v1661_v14 }
  0x60   :  { %1258 = vmatprep.subr.bf16.mxu0 %v1665_v15 }
  0x63   :  { %1260 = vmatpush1.bf16.msra.mxu0 %v1669_v20 }
  0x64   :  { %1262 = vmatprep.subr.bf16.mxu0 %v1673_v21 }
  0x67   :  { %1264 = vmatpush1.bf16.msra.mxu0 %v1677_v26 }
  0x68   :  { %1266 = vmatprep.subr.bf16.mxu0 %v1681_v27 }
  0x6b   :  { %1268 = vmatpush1.bf16.msra.mxu0 %v1685_v32 }
  0x6c   :  { %1270 = vmatprep.subr.bf16.mxu0 %v1689_v33 }
  0x6f   :  { %1272 = vmatpush1.bf16.msra.mxu0 %v1693_v38 }
  0x70   :  { %1274 = vmatprep.subr.bf16.mxu0 %v1697_v39 }
  0x73   :  { %1276 = vmatpush1.bf16.msra.mxu0 %v1701_v44 }
  0x74   :  { %1278 = vmatprep.subr.bf16.mxu0 %v1705_v45 }
  0x77   :  { %1280 = vmatpush1.bf16.msra.mxu0 %v1709_v50 }
  0x78   :  { %1282 = vmatprep.subr.bf16.mxu0 %v1713_v51 }
 0x12d   :  { %v244_v28 = vpop.f32.mrb[0].mxu0 }
 0x12e   :  { %v260_v29 = vadd.f32 %v1770_v24, %v244_v28  ;;  %v246_v30 = vpop.f32.mrb[1].mxu0 }
 0x12f   :  { %v261_v31 = vadd.f32 %v1772_v25, %v246_v30 }
 0x130   :  { %330 = vmatmul.mubr.f32.vlgmr.msra.gmra.mrb[0].mxu1 %v260_v29 }
 0x131   :  { %262 = vst [vmem:[#allocation7] sm:$0x1] %v261_v31  ;;  %1236 = vmatpush1.bf16.msra.mxu1 %v1720_v57  ;;  %403 = vmatprep.mubr.f32.mxu1 %v1585_v0 }
 0x132   :  { %1238 = vmatprep.subr.bf16.mxu1 %v1724_v58 }
 0x135   :  { %1240 = vmatpush1.bf16.msra.mxu1 %v1728_v63 }
 0x136   :  { %1242 = vmatprep.subr.bf16.mxu1 %v1732_v1 }
 0x138   :  { %v1781_v34 = vld [vmem:[#allocation7] sm:$0x1] }
 0x139   :  { %1244 = vmatpush1.bf16.msra.mxu1 %v1735_v7  ;;  %v1026_v35 = vsel %vm1025_vm1, %v1781_v34, -inf }
 0x13a   :  { %1027 = vmax.xlane.f32.xlu0 %v1026_v35  ;;  %1246 = vmatprep.subr.bf16.mxu1 %v1738_v10 }
 0x13d   :  { %1248 = vmatpush1.bf16.msra.mxu1 %v1741_v13 }
 0x13e   :  { %1298 = vmatprep.subr.bf16.mxu1 %v1652_v4 }
 0x140   :  { %1144 = vmatmul.mubr.msk.f32.vlgmr.msra.gmra.mrb[0].mxu1 %vm174_vm0, %v1143_v36 }
 0x141   :  { %1300 = vmatpush1.bf16.msra.mxu1 %v1654_v8  ;;  %631 = vmatprep.mubr.f32.mxu1 %v1585_v0 }
 0x142   :  { %1302 = vmatprep.subr.bf16.mxu1 %v1656_v9 }
 0x145   :  { %1304 = vmatpush1.bf16.msra.mxu1 %v1661_v14 }
 0x146   :  { %1306 = vmatprep.subr.bf16.mxu1 %v1665_v15 }
 0x149   :  { %1308 = vmatpush1.bf16.msra.mxu1 %v1669_v20 }
 0x14a   :  { %1310 = vmatprep.subr.bf16.mxu1 %v1673_v21 }
 0x14d   :  { %1312 = vmatpush1.bf16.msra.mxu1 %v1677_v26 }
 0x14e   :  { %1314 = vmatprep.subr.bf16.mxu1 %v1681_v27 }
 0x151   :  { %1316 = vmatpush1.bf16.msra.mxu1 %v1685_v32 }
 0x152   :  { %1318 = vmatprep.subr.bf16.mxu1 %v1689_v33 }
 0x155   :  { %1320 = vmatpush1.bf16.msra.mxu1 %v1693_v38 }
 0x156   :  { %1322 = vmatprep.subr.bf16.mxu1 %v1697_v39 }
 0x159   :  { %1324 = vmatpush1.bf16.msra.mxu1 %v1701_v44 }
 0x15a   :  { %1326 = vmatprep.subr.bf16.mxu1 %v1705_v45 }
 0x15d   :  { %1328 = vmatpush1.bf16.msra.mxu1 %v1709_v50 }
 0x15e   :  { %1330 = vmatprep.subr.bf16.mxu1 %v1713_v51 }
 0x213   :  { %v405_v37 = vpop.f32.mrb[0].mxu1 }
 0x214   :  { %v410_v40 = vadd.f32 %v405_v37, %v1770_v24  ;;  %v407_v41 = vpop.f32.mrb[1].mxu1 }
 0x215   :  { %v411_v42 = vadd.f32 %v407_v41, %v1772_v25 }
 0x216   :  { %481 = vmatmul.mubr.f32.vlgmr.msra.gmra.mrb[2].mxu0 %v410_v40 }
 0x217   :  { %413 = vst [vmem:[#allocation7 + $0x1] sm:$0x1] %v411_v42  ;;  %1284 = vmatpush1.bf16.msra.mxu0 %v1720_v57  ;;  %554 = vmatprep.mubr.f32.mxu0 %v1585_v0 }
 0x218   :  { %1286 = vmatprep.subr.bf16.mxu0 %v1724_v58 }
 0x21b   :  { %1288 = vmatpush1.bf16.msra.mxu0 %v1728_v63 }
 0x21c   :  { %1290 = vmatprep.subr.bf16.mxu0 %v1732_v1 }
 0x21e   :  { %v1817_v43 = vld [vmem:[#allocation7 + $0x1] sm:$0x1] }
 0x21f   :  { %1292 = vmatpush1.bf16.msra.mxu0 %v1735_v7  ;;  %v1029_v46 = vsel %vm1025_vm1, %v1817_v43, -inf }
 0x220   :  { %1030 = vmax.xlane.f32.xlu0 %v1029_v46  ;;  %1294 = vmatprep.subr.bf16.mxu0 %v1738_v10 }
 0x223   :  { %1296 = vmatpush1.bf16.msra.mxu0 %v1741_v13 }
 0x224   :  { %1346 = vmatprep.subr.bf16.mxu0 %v1652_v4 }
 0x226   :  { %1146 = vmatmul.mubr.msk.f32.vlgmr.msra.gmra.mrb[2].mxu0 %vm174_vm0, %v1145_v47 }
 0x227   :  { %1348 = vmatpush1.bf16.msra.mxu0 %v1654_v8  ;;  %782 = vmatprep.mubr.f32.mxu0 %v1585_v0 }
 0x228   :  { %1350 = vmatprep.subr.bf16.mxu0 %v1656_v9 }
 0x22b   :  { %1352 = vmatpush1.bf16.msra.mxu0 %v1661_v14 }
 0x22c   :  { %1354 = vmatprep.subr.bf16.mxu0 %v1665_v15 }
 0x22f   :  { %1356 = vmatpush1.bf16.msra.mxu0 %v1669_v20 }
 0x230   :  { %1358 = vmatprep.subr.bf16.mxu0 %v1673_v21 }
 0x233   :  { %1360 = vmatpush1.bf16.msra.mxu0 %v1677_v26 }
 0x234   :  { %1362 = vmatprep.subr.bf16.mxu0 %v1681_v27 }
 0x237   :  { %1364 = vmatpush1.bf16.msra.mxu0 %v1685_v32 }
 0x238   :  { %1366 = vmatprep.subr.bf16.mxu0 %v1689_v33 }
 0x23b   :  { %1368 = vmatpush1.bf16.msra.mxu0 %v1693_v38 }
 0x23c   :  { %1370 = vmatprep.subr.bf16.mxu0 %v1697_v39 }
 0x23f   :  { %1372 = vmatpush1.bf16.msra.mxu0 %v1701_v44 }
 0x240   :  { %1374 = vmatprep.subr.bf16.mxu0 %v1705_v45 }
 0x243   :  { %1376 = vmatpush1.bf16.msra.mxu0 %v1709_v50 }
 0x244   :  { %1378 = vmatprep.subr.bf16.mxu0 %v1713_v51 }
 0x2f9   :  { %v556_v48 = vpop.f32.mrb[2].mxu0 }
 0x2fa   :  { %v561_v49 = vadd.f32 %v556_v48, %v1770_v24  ;;  %v558_v52 = vpop.f32.mrb[3].mxu0 }
 0x2fb   :  { %v562_v53 = vadd.f32 %v558_v52, %v1772_v25 }
 0x2fc   :  { %632 = vmatmul.mubr.f32.vlgmr.msra.gmra.mrb[2].mxu1 %v561_v49 }
 0x2fd   :  { %564 = vst [vmem:[#allocation7 + $0x2] sm:$0x1] %v562_v53  ;;  %1332 = vmatpush1.bf16.msra.mxu1 %v1720_v57  ;;  %705 = vmatprep.mubr.f32.mxu1 %v1585_v0 }
 0x2fe   :  { %1334 = vmatprep.subr.bf16.mxu1 %v1724_v58 }
 0x301   :  { %1336 = vmatpush1.bf16.msra.mxu1 %v1728_v63 }
 0x302   :  { %1338 = vmatprep.subr.bf16.mxu1 %v1732_v1 }
 0x304   :  { %v1853_v54 = vld [vmem:[#allocation7 + $0x2] sm:$0x1] }
 0x305   :  { %1340 = vmatpush1.bf16.msra.mxu1 %v1735_v7  ;;  %v1032_v55 = vsel %vm1025_vm1, %v1853_v54, -inf }
 0x306   :  { %1033 = vmax.xlane.f32.xlu1 %v1032_v55  ;;  %1342 = vmatprep.subr.bf16.mxu1 %v1738_v10 }
 0x309   :  { %1344 = vmatpush1.bf16.msra.mxu1 %v1741_v13 }
 0x30a   :  { %1394 = vmatprep.subr.bf16.mxu1 %v1652_v4 }
 0x30c   :  { %1148 = vmatmul.mubr.msk.f32.vlgmr.msra.gmra.mrb[2].mxu1 %vm174_vm0, %v1147_v56 }
 0x30d   :  { %1396 = vmatpush1.bf16.msra.mxu1 %v1654_v8  ;;  %933 = vmatprep.mubr.f32.mxu1 %v1585_v0 }
 0x30e   :  { %1398 = vmatprep.subr.bf16.mxu1 %v1656_v9 }
 0x311   :  { %1400 = vmatpush1.bf16.msra.mxu1 %v1661_v14 }
 0x312   :  { %1402 = vmatprep.subr.bf16.mxu1 %v1665_v15 }
 0x315   :  { %1404 = vmatpush1.bf16.msra.mxu1 %v1669_v20 }
 0x316   :  { %1406 = vmatprep.subr.bf16.mxu1 %v1673_v21  ;;  %v1149_v21 = vld [vmem:[%s1972_s0 + $0x4] sm:$0x1] }
 0x319   :  { %1408 = vmatpush1.bf16.msra.mxu1 %v1677_v26  ;;  %v1028_v26 = vpop.xlane.xlu0 %1027 }
 0x31a   :  { %1410 = vmatprep.subr.bf16.mxu1 %v1681_v27  ;;  %v1044_v27 = vsub.f32 %v1781_v34, %v1028_v26 }
 0x31d   :  { %1412 = vmatpush1.bf16.msra.mxu1 %v1685_v32 }
 0x31e   :  { %1414 = vmatprep.subr.bf16.mxu1 %v1689_v33  ;;  %v1050_v33 = vmul.f32 1.442695, %v1044_v27 }
 0x320   :  { %1461 = vpow2.f32 %v1050_v33 }
 0x321   :  { %1416 = vmatpush1.bf16.msra.mxu1 %v1693_v38 }
 0x322   :  { %1418 = vmatprep.subr.bf16.mxu1 %v1697_v39 }
 0x325   :  { %1420 = vmatpush1.bf16.msra.mxu1 %v1701_v44 }
 0x326   :  { %1422 = vmatprep.subr.bf16.mxu1 %v1705_v45 }
 0x329   :  { %1424 = vmatpush1.bf16.msra.mxu1 %v1709_v50 }
 0x32a   :  { %1426 = vmatprep.subr.bf16.mxu1 %v1713_v51  ;;  %v1462_v61 = vpop.eup %1461 }
 0x393   :  { %v1034_v32 = vpop.xlane.xlu1 %1033 }
 0x394   :  { %v1046_v38 = vsub.f32 %v1853_v54, %v1034_v32 }
 0x396   :  { %v1054_v51 = vmul.f32 1.442695, %v1046_v38 }
 0x398   :  { %1463 = vpow2.f32 %v1054_v51 }
 0x3df   :  { %v707_v4 = vpop.f32.mrb[2].mxu1 }
 0x3e0   :  { %v712_v8 = vadd.f32 %v707_v4, %v1770_v24  ;;  %v709_v9 = vpop.f32.mrb[3].mxu1 }
 0x3e1   :  { %v713_v14 = vadd.f32 %v709_v9, %v1772_v25 }
 0x3e2   :  { %783 = vmatmul.mubr.f32.vlgmr.msra.gmra.mrb[4].mxu0 %v712_v8 }
 0x3e3   :  { %715 = vst [vmem:[#allocation7 + $0x3] sm:$0x1] %v713_v14  ;;  %1380 = vmatpush1.bf16.msra.mxu0 %v1720_v57  ;;  %856 = vmatprep.mubr.f32.mxu0 %v1585_v0 }
 0x3e4   :  { %1382 = vmatprep.subr.bf16.mxu0 %v1724_v58 }
 0x3e7   :  { %1384 = vmatpush1.bf16.msra.mxu0 %v1728_v63 }
 0x3e8   :  { %1386 = vmatprep.subr.bf16.mxu0 %v1732_v1 }
 0x3ea   :  { %v1889_v15 = vld [vmem:[#allocation7 + $0x3] sm:$0x1] }
 0x3eb   :  { %1388 = vmatpush1.bf16.msra.mxu0 %v1735_v7  ;;  %v1035_v20 = vsel %vm1025_vm1, %v1889_v15, -inf }
 0x3ec   :  { %1036 = vmax.xlane.f32.xlu1 %v1035_v20  ;;  %1390 = vmatprep.subr.bf16.mxu0 %v1738_v10 }
 0x3ef   :  { %1392 = vmatpush1.bf16.msra.mxu0 %v1741_v13 }
 0x3f2   :  { %1150 = vmatmul.mubr.msk.f32.vlgmr.msra.gmra.mrb[4].mxu0 %vm174_vm0, %v1149_v21 }
 0x479   :  { %v1037_v28 = vpop.xlane.xlu1 %1036 }
 0x47a   :  { %v1047_v30 = vsub.f32 %v1889_v15, %v1037_v28 }
 0x4c5   :  { %v858_v39 = vpop.f32.mrb[4].mxu0 }
 0x4c6   :  { %v863_v44 = vadd.f32 %v858_v39, %v1770_v24  ;;  %v860_v45 = vpop.f32.mrb[5].mxu0 }
 0x4c7   :  { %v864_v50 = vadd.f32 %v860_v45, %v1772_v25 }
 0x4c8   :  { %934 = vmatmul.mubr.f32.vlgmr.msra.gmra.mrb[4].mxu1 %v863_v44 }
 0x4c9   :  { %866 = vst [vmem:[#allocation7 + $0x4] sm:$0x1] %v864_v50  ;;  %1428 = vmatpush1.bf16.msra.mxu1 %v1720_v57  ;;  %1007 = vmatprep.mubr.f32.mxu1 %v1585_v0  ;;  %v1062_v0 = vsel %vm1025_vm1, %v1462_v61, 0.0  ;;  %v1151_v57 = vld [vmem:[%s1972_s0 + $0x5] sm:$0x1]  ;;  %s1586_s0 = smov [#allocation8]  }
 0x4ca   :  { %1430 = vmatprep.subr.bf16.mxu1 %v1724_v58  ;;  %v1464_v58 = vpop.eup %1463  ;;  %s1128_s12 = sshll.u32 %s1586_s0, 4  ;;  %s1129_s12 = int_to_ptr.vmem [resolvable:$true] %s1128_s12 }
 0x4cb   :  { %v1068_v62 = vsel %vm1025_vm1, %v1464_v58, 0.0  ;;  %s1529_s13 = scalar_lea.vmem %s1129_s12, 16  ;;  %s1533_s14 = scalar_lea.vmem %s1129_s12, 32 }
 0x4cc   :  { %p1530_p2 = scmp.ne.s32.totalorder %s1129_s12, %s1529_s13  ;;  %p1534_p3 = scmp.lt.s32.totalorder %s1129_s12, %s1129_s12 }
 0x4cd   :  { %1432 = vmatpush1.bf16.msra.mxu1 %v1728_v63  ;;  %v1922_v63 = vpop.xlane.xlu0 %1030  ;;  %p1535_p4 = scmp.lt.s32.totalorder %s1533_s14, %s1529_s13 }
 0x4ce   :  { %1434 = vmatprep.subr.bf16.mxu1 %v1732_v1  ;;  %v1045_v23 = vsub.f32 %v1817_v43, %v1922_v63 }
 0x4cf   :  { %p1536_p5 = por %p1535_p4, %p1534_p3 }
 0x4d0   :  { %v1909_v59 = vld [vmem:[#allocation7 + $0x4] sm:$0x1]  ;;  %v1052_v29 = vmul.f32 1.442695, %v1045_v23 }
 0x4d1   :  { %1436 = vmatpush1.bf16.msra.mxu1 %v1735_v7  ;;  %v1038_v60 = vsel %vm1025_vm1, %v1909_v59, -inf  ;;  %p1537_p6 = pnand %p1536_p5, %p1530_p2 }
 0x4d2   :  { %1039 = vmax.xlane.f32.xlu0 %v1038_v60  ;;  %1438 = vmatprep.subr.bf16.mxu1 %v1738_v10 }
 0x4d5   :  { %1440 = vmatpush1.bf16.msra.mxu1 %v1741_v13 }
 0x4d6   :  { %1063 = vadd.xlane.f32.xlu0 %v1062_v0 }
 0x4d8   :  { %1152 = vmatmul.mubr.msk.f32.vlgmr.msra.gmra.mrb[4].mxu1 %vm174_vm0, %v1151_v57 }
 0x4da   :  { %1069 = vadd.xlane.f32.xlu0 %v1068_v62 }
 0x55f   :  { %v1040_v1 = vpop.xlane.xlu0 %1039 }
 0x560   :  { %v1048_v2 = vsub.f32 %v1909_v59, %v1040_v1 }
 0x562   :  { %v1058_v3 = vmul.f32 1.442695, %v1048_v2 }
 0x563   :  { %v1064_v5 = vpop.xlane.xlu0 %1063 }
 0x564   :  { %1465 = vpow2.f32 %v1058_v3 }
 0x565   :  { %1467 = vlog2.f32 %v1064_v5 }
 0x567   :  { %v1070_v6 = vpop.xlane.xlu0 %1069 }
 0x568   :  { %1469 = vlog2.f32 %v1070_v6 }
 0x569   :  { %1471 = vpow2.f32 %v1052_v29 }
 0x56e   :  { %v1466_v7 = vpop.eup %1465 }
 0x56f   :  { %v1468_v10 = vpop.eup %1467  ;;  %v1074_v11 = vsel %vm1025_vm1, %v1466_v7, 0.0 }
 0x570   :  { %v1081_v12 = vmul.f32 0.6931472, %v1468_v10  ;;  %1075 = vadd.xlane.f32.xlu0 %v1074_v11 }
 0x572   :  { %v1470_v13 = vpop.eup %1469  ;;  %v1092_v16 = vadd.f32 %v1081_v12, %v1028_v26 }
 0x573   :  { %v1085_v17 = vmul.f32 0.6931472, %v1470_v13  ;;  %v1472_v42 = vpop.eup %1471 }
 0x574   :  { %v1098_v18 = vsub.f32 %v1781_v34, %v1092_v16  ;;  %v1056_v34 = vmul.f32 1.442695, %v1047_v30  ;;  %v1065_v46 = vsel %vm1025_vm1, %v1472_v42, 0.0 }
 0x575   :  { %v1094_v19 = vadd.f32 %v1085_v17, %v1034_v32 }
 0x576   :  { %1104 = vst [vmem:[#allocation7] sm:$0x1] %v1098_v18  ;;  %1473 = vpow2.f32 %v1056_v34 }
 0x577   :  { %v1100_v22 = vsub.f32 %v1853_v54, %v1094_v19 }
 0x579   :  { %1106 = vst [vmem:[#allocation7 + $0x2] sm:$0x1] %v1100_v22 }
 0x580   :  { %v1474_v47 = vpop.eup %1473 }
 0x5ab   :  { %v1009_v31 = vpop.f32.mrb[4].mxu1 }
 0x5ac   :  { %v1014_v35 = vadd.f32 %v1009_v31, %v1770_v24  ;;  %v1011_v36 = vpop.f32.mrb[5].mxu1  ;;  %v1071_v24 = vsel %vm1025_vm1, %v1474_v47, 0.0 }
 0x5ad   :  { %v1015_v37 = vadd.f32 %v1011_v36, %v1772_v25 }
 0x5ae   :  { %1018 = vst [vmem:[#allocation8] sm:$0x1] %v1014_v35 }
 0x5af   :  { %1017 = vst [vmem:[#allocation7 + $0x5] sm:$0x1] %v1015_v37 }
 0x5b6   :  { %v1933_v40 = vld [vmem:[#allocation7 + $0x5] sm:$0x1] }
 0x5b7   :  { %v1041_v41 = vsel %vm1025_vm1, %v1933_v40, -inf }
 0x5b8   :  { %1042 = vmax.xlane.f32.xlu1 %v1041_v41 }
 0x5bc   :  { %1066 = vadd.xlane.f32.xlu1 %v1065_v46 }
 0x5c0   :  { %1072 = vadd.xlane.f32.xlu1 %v1071_v24 }
 0x5fd   :  { %v1076_v25 = vpop.xlane.xlu0 %1075 }
 0x5fe   :  { %1475 = vlog2.f32 %v1076_v25 }
 0x608   :  { %v1476_v48 = vpop.eup %1475 }
 0x609   :  { %v1089_v49 = vmul.f32 0.6931472, %v1476_v48 }
 0x60b   :  { %v1096_v52 = vadd.f32 %v1089_v49, %v1040_v1 }
 0x60d   :  { %v1102_v53 = vsub.f32 %v1909_v59, %v1096_v52 }
 0x60f   :  { %1108 = vst [vmem:[#allocation7 + $0x4] sm:$0x1] %v1102_v53 }
 0x645   :  { %v1043_v54 = vpop.xlane.xlu1 %1042 }
 0x646   :  { %v1049_v55 = vsub.f32 %v1933_v40, %v1043_v54 }
 0x648   :  { %v1060_v56 = vmul.f32 1.442695, %v1049_v55 }
 0x649   :  { %v1067_v4 = vpop.xlane.xlu1 %1066 }
 0x64a   :  { %1477 = vpow2.f32 %v1060_v56 }
 0x64b   :  { %1479 = vlog2.f32 %v1067_v4 }
 0x64d   :  { %v1073_v8 = vpop.xlane.xlu1 %1072 }
 0x64e   :  { %1481 = vlog2.f32 %v1073_v8 }
 0x654   :  { %v1478_v9 = vpop.eup %1477 }
 0x655   :  { %v1480_v14 = vpop.eup %1479  ;;  %v1077_v20 = vsel %vm1025_vm1, %v1478_v9, 0.0 }
 0x656   :  { %v1083_v21 = vmul.f32 0.6931472, %v1480_v14  ;;  %1078 = vadd.xlane.f32.xlu1 %v1077_v20 }
 0x658   :  { %v1482_v26 = vpop.eup %1481  ;;  %v1093_v27 = vadd.f32 %v1083_v21, %v1922_v63 }
 0x659   :  { %v1087_v32 = vmul.f32 0.6931472, %v1482_v26 }
 0x65a   :  { %v1099_v33 = vsub.f32 %v1817_v43, %v1093_v27 }
 0x65b   :  { %v1095_v38 = vadd.f32 %v1087_v32, %v1037_v28 }
 0x65c   :  { %1105 = vst [vmem:[#allocation7 + $0x1] sm:$0x1] %v1099_v33 }
 0x65d   :  { %v1101_v39 = vsub.f32 %v1889_v15, %v1095_v38 }
 0x65f   :  { %1107 = vst [vmem:[#allocation7 + $0x3] sm:$0x1] %v1101_v39 }
 0x660   :  { %1540 = shalt.err (!%p1537_p6)
}
 0x661   :  { %s1541_s17 = scalar_lea.hbm %s1978_s6, 16 }
 0x662   :  { %p1542_p7 = scmp.ne.s32.totalorder %s1978_s6, %s1541_s17  ;;  %p1545_p8 = scmp.lt.u32.totalorder %s1541_s17, %s1978_s6 }
 0x664   :  { %p1547_p9 = pnand %p1545_p8, %p1542_p7 }
 0x666   :  { %1550 = shalt.err (!%p1547_p9)
}
 0x667   :  { %1131 = dma.vmem_to_hbm [thread:$0]  %s1129_s12, 16, %s1978_s6, [#allocation9]  }
 0x668   :  { %s1587_s22 = smov [#allocation7]  }
 0x669   :  { %s1115_s1 = sshll.u32 %s1587_s22, 4  ;;  %s1116_s1 = int_to_ptr.vmem [resolvable:$true] %s1115_s1 }
 0x66a   :  { %s1551_s23 = scalar_lea.vmem %s1116_s1, 96  ;;  %p1556_p11 = scmp.lt.s32.totalorder %s1116_s1, %s1116_s1 }
 0x66b   :  { %p1552_p10 = scmp.ne.s32.totalorder %s1116_s1, %s1551_s23  ;;  %p1557_p12 = scmp.lt.s32.totalorder %s1551_s23, %s1551_s23 }
 0x66d   :  { %p1558_p13 = por %p1557_p12, %p1556_p11 }
 0x66f   :  { %p1559_p0 = pnand %p1558_p13, %p1552_p10 }
 0x6e3   :  { %v1079_v43 = vpop.xlane.xlu1 %1078 }
 0x6e4   :  { %1483 = vlog2.f32 %v1079_v43 }
 0x6ee   :  { %v1484_v15 = vpop.eup %1483 }
 0x6ef   :  { %v1091_v44 = vmul.f32 0.6931472, %v1484_v15 }
 0x6f1   :  { %v1097_v45 = vadd.f32 %v1091_v44, %v1043_v54 }
 0x6f3   :  { %v1103_v50 = vsub.f32 %v1933_v40, %v1097_v45 }
 0x6f5   :  { %1109 = vst [vmem:[#allocation7 + $0x5] sm:$0x1] %v1103_v50 }
 0x6f6   :  { %1562 = shalt.err (!%p1559_p0)
}
 0x6f7   :  { %s1563_s25 = scalar_lea.hbm %s1977_s5, 96 }
 0x6f8   :  { %p1564_p1 = scmp.ne.s32.totalorder %s1977_s5, %s1563_s25  ;;  %p1567_p2 = scmp.lt.u32.totalorder %s1563_s25, %s1977_s5 }
 0x6fa   :  { %p1569_p3 = pnand %p1567_p2, %p1564_p1 }
 0x6fc   :  { %1572 = shalt.err (!%p1569_p3)
}
 0x6fd   :  { %s1588_s29 = smov 1  }
 0x6fe   :  { %1121 = dma.vmem_to_hbm [thread:$0]  %s1116_s1, 96, %s1977_s5, [#allocation4], %s1583_s8, %s1583_s8, %s1588_s29  }
 0x6ff   :  { %1577 = dma.done.wait [#allocation4], 96  }
 0x700   :  { %1578 = vsyncadd [#allocation4], 4294967200 }
 0x701   :  { %1579 = dma.done.wait [#allocation9], 16  }
 0x702   :  { %1580 = vsyncadd [#allocation9], 4294967280 }
 0x703   :  { %1138 = vsyncpa [#allocation3], 1 }
 0x704   :  { %1139 = vsyncpa [#allocation6], 1 }
 0x705   :  { %1140 = vsyncpa [#allocation4], 1 }
 0x706   :  { %1141 = vsyncpa [#allocation9], 1 }

</bundles_post_ra>
